<compile_context>
chip_gen: v7x
topology: tpu7x:2x2x1
jax: 0.10.0
libtpu: 0.0.40
codegen_flags: <defaults>
</compile_context>

<pallas_src>
import math

import numpy as np
import jax
import jax.numpy as jnp
from jax.experimental import pallas as pl
from jax.experimental.pallas import tpu as pltpu


_LANE = 128
_SUBLANE = 8
_DEFAULT_BLOCK_B = 512            # batch rows per tile
_DEFAULT_BLOCK_N = 512            # output columns per tile
_VMEM_BUDGET = 40 * 1024 * 1024   # keep well under v7x's 64 MiB physical VMEM
_VMEM_LIMIT = 64 * 1024 * 1024    # raise above the 32 MiB default scoped limit


def _hadamard_matrix(D: int) -> np.ndarray:
    """Sylvester (natural-ordered) Hadamard matrix; matches FWHTFunction.transform."""
    assert D > 0 and (D & (D - 1)) == 0, "D must be a power of 2"
    H = np.array([[1.0]], dtype=np.float32)
    for _ in range(int(math.log2(D))):
        H = np.block([[H, H], [H, -H]]).astype(np.float32)
    return H


def _fwht_kernel(x_ref, h_ref, o_ref):
    # y = x @ H. H may be stored as bf16 (entries are exactly +/-1, lossless);
    # cast to the input dtype so the MXU runs one homogeneous matmul with f32
    # accumulation via preferred_element_type.
    x = x_ref[...]
    h = h_ref[...].astype(x.dtype)
    o_ref[...] = jnp.dot(x, h, preferred_element_type=jnp.float32).astype(o_ref.dtype)


def fwht(x: jnp.ndarray, *, block_b: int = _DEFAULT_BLOCK_B,
         block_n: int = _DEFAULT_BLOCK_N) -> jnp.ndarray:
    """Forward of the FWHT nn.Module: x of shape (B, D) -> (B, D)."""
    B, D = x.shape
    assert D > 0 and (D & (D - 1)) == 0, "D must be a power of 2"

    # --- lane-dense folding for tiny transforms ------------------------------
    # For D < 128 the transform dim fills only D of the 128 vreg lanes; fold
    # g = 128 // D independent rows into one lane-dense row and use a
    # block-diagonal Hadamard kron(I_g, H_D).
    g = _LANE // D if D < _LANE else 1
    Dk = D * g

    # --- tile-size selection --------------------------------------------------
    Bf = -(-B // g)                                        # folded batch rows
    block_b = max(_SUBLANE, -(-block_b // _SUBLANE) * _SUBLANE)
    bm = min(block_b, Bf)
    bn = min(Dk, max(_LANE, 1 << int(math.log2(max(block_n, _LANE)))))

    x_item = jnp.dtype(x.dtype).itemsize
    if x.dtype == jnp.float32 or x.dtype == jnp.bfloat16:
        h_dtype = jnp.bfloat16                             # lossless for +/-1
    else:
        h_dtype = x.dtype
    h_item = jnp.dtype(h_dtype).itemsize

    def _vmem_bytes(bm_, bn_):
        # double-buffered x tile + out tile + H column block
        return 2 * (bm_ * Dk * x_item + bm_ * bn_ * x_item + Dk * bn_ * h_item)

    # Shrink tiles (largest contributor first) until they fit the VMEM budget.
    while _vmem_bytes(bm, bn) > _VMEM_BUDGET:
        h_bytes = 2 * Dk * bn * h_item
        xo_bytes = 2 * bm * (Dk + bn) * x_item
        if h_bytes >= xo_bytes and bn > _LANE:
            bn //= 2
        elif bm > _SUBLANE:
            bm = max(_SUBLANE, ((bm // 2) + _SUBLANE - 1) // _SUBLANE * _SUBLANE)
        elif bn > _LANE:
            bn //= 2
        else:
            break

    Bp = -(-Bf // bm) * bm                                 # padded folded rows

    # --- pad + fold the input -------------------------------------------------
    rows_needed = Bp * g
    if rows_needed != B:
        x = jnp.pad(x, ((0, rows_needed - B), (0, 0)))     # zero rows: WHT(0)=0
    x_f = x.reshape(Bp, Dk)

    # --- Hadamard operand -----------------------------------------------------
    H = _hadamard_matrix(D)
    if g > 1:
        H = np.kron(np.eye(g, dtype=np.float32), H)        # block-diagonal
    H = jnp.asarray(H, dtype=h_dtype)

    grid = (Bp // bm, Dk // bn)
    cost = pl.CostEstimate(
        flops=2 * Bp * Dk * Dk,
        transcendentals=0,
        bytes_accessed=2 * Bp * Dk * x_item + grid[0] * Dk * Dk * h_item,
    )

    y_f = pl.pallas_call(
        _fwht_kernel,
        out_shape=jax.ShapeDtypeStruct((Bp, Dk), x.dtype),
        grid_spec=pltpu.PrefetchScalarGridSpec(
            num_scalar_prefetch=0,
            grid=grid,
            in_specs=[
                pl.BlockSpec((bm, Dk), lambda i, j: (i, 0)),   # x tile (full K)
                pl.BlockSpec((Dk, bn), lambda i, j: (0, j)),   # H column block
            ],
            out_specs=pl.BlockSpec((bm, bn), lambda i, j: (i, j)),
        ),
        compiler_params=pltpu.CompilerParams(
            dimension_semantics=("parallel", "parallel"),
            vmem_limit_bytes=_VMEM_LIMIT,
        ),
        cost_estimate=cost,
    )(x_f, H)

    return y_f.reshape(Bp * g, D)[:B]


def _fwht_reference(x: np.ndarray) -> np.ndarray:
    """Direct NumPy port of the PyTorch FWHTFunction.transform (cat-based butterfly)."""
    x = np.asarray(x, dtype=np.float64)
    B, D = x.shape
    out = x[:, :, None]
    for _ in range(int(math.log2(D))):
        out = np.concatenate(
            [out[:, ::2] + out[:, 1::2], out[:, ::2] - out[:, 1::2]], axis=2
        )
    return out[:, 0, :]


if __name__ == "__main__":
    key = jax.random.PRNGKey(0)

    # Small shapes consistent with the module's contract: x is (B, D), D = 2^k.
    cases = [
        ((8, 32), {}),                                  # tiny D -> lane-dense fold
        ((12, 128), {}),                                # D == lane width
        ((40, 256), dict(block_b=16, block_n=128)),     # multi-block grid + batch pad
    ]

    for (B, D), kw in cases:
        key, sub = jax.random.split(key)
        x = jax.random.normal(sub, (B, D), dtype=jnp.float32)
        y = jax.block_until_ready(fwht(x, **kw))
        y_ref = _fwht_reference(np.asarray(x))
        np.testing.assert_allclose(
            np.asarray(y, dtype=np.float64), y_ref, rtol=1e-5, atol=1e-4
        )

    print("KERNEL_OK")
</pallas_src>

<mosaic_0001>
module attributes {stable_mosaic.version = 11 : i64} {
  func.func @_fwht_kernel(%arg0: i32, %arg1: i32, %arg2: memref<2x128xf32, #tpu.memory_space<vmem>>, %arg3: memref<128x128xbf16, #tpu.memory_space<vmem>>, %arg4: memref<2x128xf32, #tpu.memory_space<vmem>>) attributes {dimension_semantics = [#tpu.dimension_semantics<parallel>, #tpu.dimension_semantics<parallel>], iteration_bounds = array<i64: 1, 1>, scalar_prefetch = 0 : i64, scratch_operands = 0 : i64, tpu.core_type = #tpu.core_type<tc>, window_params = [{transform_indices = @transform_0, window_bounds = array<i64: 2, 128>}, {transform_indices = @transform_1, window_bounds = array<i64: 128, 128>}, {transform_indices = @transform_2, window_bounds = array<i64: 2, 128>}]} {
    %c0 = arith.constant 0 : index
    %c0_0 = arith.constant 0 : index
    %0 = vector.load %arg2[%c0, %c0_0] : memref<2x128xf32, #tpu.memory_space<vmem>>, vector<2x128xf32>
    %c0_1 = arith.constant 0 : index
    %c0_2 = arith.constant 0 : index
    %1 = vector.load %arg3[%c0_1, %c0_2] : memref<128x128xbf16, #tpu.memory_space<vmem>>, vector<128x128xbf16>
    %2 = arith.extf %1 : vector<128x128xbf16> to vector<128x128xf32>
    %cst = arith.constant dense<0.000000e+00> : vector<2x128xf32>
    %3 = tpu.matmul %0, %2, %cst {dimension_numbers = #tpu.dot_dimension_numbers<[1], [0], [0], [1], [0, 0, 1, 1], [], []>} : vector<2x128xf32>, vector<128x128xf32>, vector<2x128xf32> -> vector<2x128xf32>
    %c0_3 = arith.constant 0 : index
    %c0_4 = arith.constant 0 : index
    %4 = vector.load %arg4[%c0_3, %c0_4] : memref<2x128xf32, #tpu.memory_space<vmem>>, vector<2x128xf32>
    tpu.vector_store %arg4[%c0_3, %c0_4], %3 {strides = array<i32>} : memref<2x128xf32, #tpu.memory_space<vmem>>, vector<2x128xf32>,
    return
  }
  func.func @transform_0(%arg0: i32, %arg1: i32) -> (i32, i32) {
    %c0_i32 = arith.constant 0 : i32
    %c0_i32_0 = arith.constant 0 : i32
    return %arg0, %c0_i32 : i32, i32
  }
  func.func @transform_1(%arg0: i32, %arg1: i32) -> (i32, i32) {
    %c0_i32 = arith.constant 0 : i32
    %c0_i32_0 = arith.constant 0 : i32
    return %c0_i32, %arg1 : i32, i32
  }
  func.func @transform_2(%arg0: i32, %arg1: i32) -> (i32, i32) {
    %c0_i32 = arith.constant 0 : i32
    return %arg0, %arg1 : i32, i32
  }
}

</mosaic_0001>

<bundles_post_ra>
// kernel: tpu_custom_call.1
= control target key start
LH: loop header
LB: loop body
LE: loop exit
PB: predicated region body
PF: predicated region fallthrough
CT: control target
= control target key end

     0   :  { %7 = vsyncpa [#allocation3], 0  ;;  %s419_s0 = inlined_call_operand.hbm [shape: f32[2,128], index: 0, kind: input, shape index: {}]   ;;  %s420_s1 = inlined_call_operand.hbm [shape: bf16[128,128], index: 1, kind: input, shape index: {}]   ;;  %s421_s2 = inlined_call_operand.hbm [shape: f32[2,128], index: 2, kind: output, shape index: {}]  }
   0x1   :  { %8 = vsyncpa [#allocation6], 0 }
   0x2   :  { %9 = vsyncpa [#allocation4], 0  ;;  %s353_s9 = smov [#allocation2]   ;;  %s354_s11 = smov [#allocation5]  }
   0x3   :  { %s16_s10 = sshll.u32 %s353_s9, 4  ;;  %s25_s12 = sshll.u32 %s354_s11, 4  ;;  %s17_s10 = int_to_ptr.vmem [resolvable:$true] %s16_s10  ;;  %s376_s12 = int_to_ptr.vmem [resolvable:$true] %s25_s12 }
   0x4   :  { %s281_s15 = scalar_lea.hbm %s419_s0, 32 }
   0x5   :  { %p282_p0 = scmp.ne.s32.totalorder %s419_s0, %s281_s15  ;;  %p285_p1 = scmp.lt.u32.totalorder %s281_s15, %s419_s0 }
   0x7   :  { %p287_p2 = pnand %p285_p1, %p282_p0 }
   0x9   :  { %290 = shalt.err (!%p287_p2)
}
   0xa   :  { %s291_s20 = scalar_lea.vmem %s17_s10, 32  ;;  %p296_p4 = scmp.lt.s32.totalorder %s17_s10, %s17_s10 }
   0xb   :  { %p292_p3 = scmp.ne.s32.totalorder %s17_s10, %s291_s20  ;;  %p297_p5 = scmp.lt.s32.totalorder %s291_s20, %s291_s20 }
   0xd   :  { %p298_p6 = por %p297_p5, %p296_p4 }
   0xf   :  { %p299_p7 = pnand %p298_p6, %p292_p3 }
  0x11   :  { %302 = shalt.err (!%p299_p7)
}
  0x12   :  { %19 = dma.hbm_to_vmem [thread:$0]  %s419_s0, 32, %s17_s10, [#allocation3]  }
  0x13   :  { %s303_s25 = scalar_lea.hbm %s420_s1, 1024 }
  0x14   :  { %p304_p8 = scmp.ne.s32.totalorder %s420_s1, %s303_s25  ;;  %p307_p9 = scmp.lt.u32.totalorder %s303_s25, %s420_s1 }
  0x16   :  { %p309_p10 = pnand %p307_p9, %p304_p8 }
  0x18   :  { %312 = shalt.err (!%p309_p10)
}
  0x19   :  { %s313_s30 = scalar_lea.vmem %s376_s12, 1024  ;;  %p318_p12 = scmp.lt.s32.totalorder %s376_s12, %s376_s12 }
  0x1a   :  { %p314_p11 = scmp.ne.s32.totalorder %s376_s12, %s313_s30  ;;  %p319_p13 = scmp.lt.s32.totalorder %s313_s30, %s313_s30 }
  0x1c   :  { %p320_p0 = por %p319_p13, %p318_p12 }
  0x1e   :  { %p321_p1 = pnand %p320_p0, %p314_p11 }
  0x20   :  { %324 = shalt.err (!%p321_p1)
}
  0x21   :  { %s355_s0 = smov 64   ;;  %s356_s3 = smov 4  }
  0x22   :  { %31 = dma.hbm_to_vmem [thread:$0]  %s420_s1, 1024, %s376_s12, [#allocation6], %s355_s0, %s355_s0, %s356_s3  }
  0x23   :  { %347 = dma.done.wait [#allocation3], 32  }
  0x24   :  { %348 = vsyncadd [#allocation3], 4294967264 }
  0x25   :  { %349 = dma.done.wait [#allocation6], 1024  }
  0x26   :  { %350 = vsyncadd [#allocation6], 4294966272  ;;  %v357_v0 = vmov 0.0|0.0   ;;  %vm358_vm0 = vmmov 0   ;;  %v359_v1 = vmov 0.0   ;;  %v159_v2 = vld [vmem:[#allocation5] sm:$0xff]  }
  0x27   :  { %249 = vmatprep.subr.bf16.mxu0 %v357_v0  ;;  %246 = vmatprep.mubr.msk.f32.mxu0 %vm358_vm0, %v359_v1  ;;  %v190_v3 = vld [vmem:[#allocation5 + $0x8] sm:$0xff]   ;;  %v191_v4 = vld [vmem:[#allocation5 + $0x10] sm:$0xff]   ;;  %v192_v5 = vld [vmem:[#allocation5 + $0x18] sm:$0xff]   ;;  %s360_s1 = smov [#allocation7]  }
  0x28   :  { %251 = vmatpush3.bf16.msra.mxu0 %v159_v2  ;;  %v193_v6 = vld [vmem:[#allocation5 + $0x20] sm:$0xff]   ;;  %v194_v7 = vld [vmem:[#allocation5 + $0x28] sm:$0xff]   ;;  %v195_v8 = vld [vmem:[#allocation5 + $0x30] sm:$0xff]   ;;  %s148_s6 = sshll.u32 %s360_s1, 4  ;;  %s149_s6 = int_to_ptr.vmem [resolvable:$true] %s148_s6 }
  0x29   :  { %252 = vmatprep.subr.bf16.mxu0 %v357_v0  ;;  %v196_v9 = vld [vmem:[#allocation5 + $0x38] sm:$0xff]   ;;  %s325_s7 = scalar_lea.vmem %s149_s6, 32  ;;  %p330_p3 = scmp.lt.s32.totalorder %s149_s6, %s149_s6 }
  0x2a   :  { %v38_v10 = vld [vmem:[#allocation2] sm:$0x3]  ;;  %p326_p2 = scmp.ne.s32.totalorder %s149_s6, %s325_s7  ;;  %p331_p4 = scmp.lt.s32.totalorder %s325_s7, %s325_s7 }
  0x2c   :  { %254 = vmatpush3.bf16.msra.mxu0 %v190_v3  ;;  %p332_p5 = por %p331_p4, %p330_p3 }
  0x2d   :  { %255 = vmatprep.subr.bf16.mxu0 %v357_v0 }
  0x2e   :  { %p333_p6 = pnand %p332_p5, %p326_p2 }
  0x30   :  { %257 = vmatpush3.bf16.msra.mxu0 %v191_v4 }
  0x31   :  { %258 = vmatprep.subr.bf16.mxu0 %v357_v0 }
  0x34   :  { %260 = vmatpush3.bf16.msra.mxu0 %v192_v5 }
  0x35   :  { %261 = vmatprep.subr.bf16.mxu0 %v357_v0 }
  0x38   :  { %263 = vmatpush3.bf16.msra.mxu0 %v193_v6 }
  0x39   :  { %264 = vmatprep.subr.bf16.mxu0 %v357_v0 }
  0x3c   :  { %266 = vmatpush3.bf16.msra.mxu0 %v194_v7 }
  0x3d   :  { %267 = vmatprep.subr.bf16.mxu0 %v357_v0 }
  0x40   :  { %269 = vmatpush3.bf16.msra.mxu0 %v195_v8 }
  0x41   :  { %270 = vmatprep.subr.bf16.mxu0 %v357_v0 }
  0x44   :  { %272 = vmatpush3.bf16.msra.mxu0 %v196_v9 }
  0x47   :  { %247 = vmatmul.mubr.f32.vlgmr.msra.gmra.mrb[0].mxu0 %v38_v10 }
 0x11a   :  { %v137_v11 = vpop.f32.mrb[0].mxu0 }
 0x11b   :  { %141 = vst [vmem:[#allocation7] sm:$0x3] %v137_v11  ;;  %v248_v12 = vpop.f32.mrb[1].mxu0 }
 0x11c   :  { %336 = shalt.err (!%p333_p6)
}
 0x11d   :  { %s337_s10 = scalar_lea.hbm %s421_s2, 32 }
 0x11e   :  { %p338_p7 = scmp.ne.s32.totalorder %s421_s2, %s337_s10  ;;  %p341_p8 = scmp.lt.u32.totalorder %s337_s10, %s421_s2 }
 0x120   :  { %p343_p9 = pnand %p341_p8, %p338_p7 }
 0x122   :  { %346 = shalt.err (!%p343_p9)
}
 0x123   :  { %151 = dma.vmem_to_hbm [thread:$0]  %s149_s6, 32, %s421_s2, [#allocation4]  }
 0x124   :  { %351 = dma.done.wait [#allocation4], 32  }
 0x125   :  { %352 = vsyncadd [#allocation4], 4294967264 }
 0x126   :  { %155 = vsyncpa [#allocation3], 1 }
 0x127   :  { %156 = vsyncpa [#allocation6], 1 }
 0x128   :  { %157 = vsyncpa [#allocation4], 1 }

</bundles_post_ra>
